<compile_context>
chip_gen: v7x
topology: tpu7x:2x2x1
jax: 0.10.0
libtpu: 0.0.40
codegen_flags: <defaults>
</compile_context>

<pallas_src>
import jax
import jax.numpy as jnp
from jax.experimental import pallas as pl
from jax.experimental.pallas import tpu as pltpu


# ---------------------------------------------------------------------------
# Pallas kernel
# ---------------------------------------------------------------------------
def commander_actor_kernel(
    x_ref,        # (T*Bp, 2S)  [x | x_time_reversed], rows = t*Bp + b (time-major, padded batch)
    h0_ref,       # (Bp, 2H)    [h0_f | h0_b]
    w1_ref,       # (2S, 2R)    block-diag fc1 weight (transposed)
    wih_ref,      # (2R, 2H)    block-diag RNN input weights (transposed)
    whh_ref,      # (2H, 2H)    block-diag RNN recurrent weights (transposed)
    w2_ref,       # (2H, C)     fc2 weight (transposed)
    bias_ref,     # (3, W)      row0: [b1|b1] (2R), row1: [bihf+bhhf | bihb+bhhb] (2H), row2: b2 (C)
    out_ref,      # (T*Bp, C)
    zi_ref,       # VMEM scratch (T*Bp, 2H): hoisted input projections, fused-loop layout
    h_ref,        # VMEM scratch (T*Bp, 2H): per-time hidden states [h_f(t) | h_b(t)]
):
    TBp = x_ref.shape[0]
    Bp = h0_ref.shape[0]
    T = TBp // Bp
    R2 = w1_ref.shape[1]      # 2R
    H2 = whh_ref.shape[0]     # 2H
    H = H2 // 2
    C = out_ref.shape[1]

    b1 = bias_ref[0:1, 0:R2]
    bih = bias_ref[1:2, 0:H2]
    b2 = bias_ref[2:3, 0:C]

    # ---- fc1 + ReLU on [x | x_rev] (block-diag weight) -> [z | z_rev], one MXU matmul ----
    z_cat = jnp.maximum(
        jnp.dot(x_ref[...], w1_ref[...], preferred_element_type=jnp.float32) + b1,
        0.0,
    )

    # ---- hoisted RNN input projections for BOTH directions, one MXU matmul ----
    # Row block i of zi: [ z(t=i) @ Wihf^T + bf | z(t=T-1-i) @ Wihb^T + bb ]
    zi_ref[...] = (
        jnp.dot(z_cat, wih_ref[...], preferred_element_type=jnp.float32) + bih
    )

    whh = whh_ref[...]

    # ---- fused bidirectional recurrence: one matmul + one tanh per serial step ----
    def body(i, h_cat):
        io = pl.multiple_of(i * Bp, 8)            # rows for time i
        jo = pl.multiple_of((T - 1 - i) * Bp, 8)  # rows for time T-1-i
        h_cat = jnp.tanh(
            jnp.dot(h_cat, whh, preferred_element_type=jnp.float32)
            + zi_ref[pl.ds(io, Bp), :]
        )
        # Store hidden states in natural time order (off the carry chain):
        #   forward half  -> time i, backward half -> time T-1-i
        h_ref[pl.ds(io, Bp), pl.ds(0, H)] = h_cat[:, :H]
        h_ref[pl.ds(jo, Bp), pl.ds(H, H)] = h_cat[:, H:]
        return h_cat

    unroll = True if T <= 16 else 4
    jax.lax.fori_loop(0, T, body, h0_ref[...], unroll=unroll)

    # ---- fc2 hoisted out of the loop: one big matmul + bias + tanh ----
    out_ref[...] = jnp.tanh(
        jnp.dot(h_ref[...], w2_ref[...], preferred_element_type=jnp.float32) + b2
    )


# ---------------------------------------------------------------------------
# Wrapper (layout plumbing + pallas_call)
# ---------------------------------------------------------------------------
def commander_actor_forward(s, h0, params):
    """s: (B, T, state_size), h0: (2, B, H)  ->  (B, T, command_size)"""
    B, T, S = s.shape
    R = params["w1"].shape[0]
    H = params["whh_f"].shape[0]
    C = params["w2"].shape[0]
    f32 = jnp.float32

    # pad batch to the 8-sublane granule so in-kernel slices are tile aligned
    Bp = max(8, ((B + 7) // 8) * 8)

    # time-major, batch-padded input; backward direction gets its time reversal at the input
    x_tm = jnp.transpose(s, (1, 0, 2)).astype(f32)              # (T, B, S)
    x_tm = jnp.pad(x_tm, ((0, 0), (0, Bp - B), (0, 0)))         # (T, Bp, S)
    x_rev = x_tm[::-1]                                          # time reversed
    x_cat = jnp.concatenate([x_tm, x_rev], axis=-1).reshape(T * Bp, 2 * S)

    h0p = jnp.pad(h0.astype(f32), ((0, 0), (0, Bp - B), (0, 0)))  # (2, Bp, H)
    h0_cat = jnp.concatenate([h0p[0], h0p[1]], axis=-1)           # (Bp, 2H)

    z = lambda m, n: jnp.zeros((m, n), f32)
    w1t = params["w1"].T.astype(f32)                              # (S, R)
    w1_blk = jnp.block([[w1t, z(S, R)], [z(S, R), w1t]])          # (2S, 2R)
    wih_blk = jnp.block(
        [[params["wih_f"].T.astype(f32), z(R, H)],
         [z(R, H), params["wih_b"].T.astype(f32)]])               # (2R, 2H)
    whh_blk = jnp.block(
        [[params["whh_f"].T.astype(f32), z(H, H)],
         [z(H, H), params["whh_b"].T.astype(f32)]])               # (2H, 2H)
    w2t = params["w2"].T.astype(f32)                              # (2H, C)

    # pack all biases into one (3, W) array -> single DMA
    b1_cat = jnp.concatenate([params["b1"], params["b1"]]).astype(f32)            # (2R,)
    bih_cat = jnp.concatenate(
        [params["bih_f"] + params["bhh_f"], params["bih_b"] + params["bhh_b"]]
    ).astype(f32)                                                                 # (2H,)
    b2 = params["b2"].astype(f32)                                                 # (C,)
    W = max(2 * R, 2 * H, C)
    pad_row = lambda v: jnp.pad(v, (0, W - v.shape[0])).reshape(1, W)
    bias_pack = jnp.concatenate(
        [pad_row(b1_cat), pad_row(bih_cat), pad_row(b2)], axis=0)                 # (3, W)

    vmem = pl.BlockSpec(memory_space=pltpu.MemorySpace.VMEM)

    out = pl.pallas_call(
        commander_actor_kernel,
        out_shape=jax.ShapeDtypeStruct((T * Bp, C), f32),
        in_specs=[vmem] * 7,
        out_specs=vmem,
        scratch_shapes=[
            pltpu.VMEM((T * Bp, 2 * H), f32),   # zi (hoisted input projections)
            pltpu.VMEM((T * Bp, 2 * H), f32),   # hidden states, natural time order
        ],
    )(x_cat, h0_cat, w1_blk, wih_blk, whh_blk, w2t, bias_pack)

    # drop batch padding, back to (B, T, C)
    return out.reshape(T, Bp, C)[:, :B, :].transpose(1, 0, 2)


# ---------------------------------------------------------------------------
# Deterministic parameter init (mirrors shapes / init scheme of the module)
# ---------------------------------------------------------------------------
def init_params(key, state_size, command_size, rnn_insize, rnn_outsize):
    S, C = state_size, command_size
    R, H = rnn_insize, rnn_outsize
    ks = jax.random.split(key, 11)

    def xavier(k, shape):
        fan_out, fan_in = shape
        bound = (6.0 / (fan_in + fan_out)) ** 0.5
        return jax.random.uniform(k, shape, jnp.float32, -bound, bound)

    def unif(k, shape, fan_in):
        bound = 1.0 / (fan_in ** 0.5)
        return jax.random.uniform(k, shape, jnp.float32, -bound, bound)

    return {
        # fc1: xavier_uniform weight, default-uniform bias
        "w1": xavier(ks[0], (R, S)),
        "b1": unif(ks[1], (R,), S),
        # bidirectional RNN: xavier_uniform on w_ih / w_hh, default-uniform biases
        "wih_f": xavier(ks[2], (H, R)),
        "whh_f": xavier(ks[3], (H, H)),
        "bih_f": unif(ks[4], (H,), H),
        "bhh_f": unif(ks[5], (H,), H),
        "wih_b": xavier(ks[6], (H, R)),
        "whh_b": xavier(ks[7], (H, H)),
        "bih_b": unif(ks[8], (H,), H),
        "bhh_b": unif(ks[9], (H,), H),
        # fc2: weight.uniform_(0.003, 0.003) -> constant 0.003; bias default-uniform
        "w2": jnp.full((C, 2 * H), 0.003, jnp.float32),
        "b2": unif(ks[10], (C,), 2 * H),
    }


# ---------------------------------------------------------------------------
# Pure-JAX reference of the PyTorch forward (for verification)
# ---------------------------------------------------------------------------
def reference_forward(s, h0, p):
    z = jax.nn.relu(jnp.einsum("bts,rs->btr", s, p["w1"]) + p["b1"])
    xs = jnp.swapaxes(z, 0, 1)  # (T, B, R)

    def run(wih, whh, bih, bhh, h_init, reverse):
        def step(h, xt):
            h_new = jnp.tanh(xt @ wih.T + bih + h @ whh.T + bhh)
            return h_new, h_new

        _, hs = jax.lax.scan(step, h_init, xs, reverse=reverse)
        return jnp.swapaxes(hs, 0, 1)  # (B, T, H)

    hf = run(p["wih_f"], p["whh_f"], p["bih_f"], p["bhh_f"], h0[0], False)
    hb = run(p["wih_b"], p["whh_b"], p["bih_b"], p["bhh_b"], h0[1], True)
    out = jnp.concatenate([hf, hb], axis=2)
    y = jnp.tanh(jnp.einsum("bth,ch->btc", out, p["w2"]) + p["b2"])
    return y  # (B, T, C)


if __name__ == "__main__":
    # Small shapes consistent with the module's forward: s (B,T,state), h0 (2,B,H)
    B, T = 2, 8
    state_size, command_size = 12, 4
    rnn_insize, rnn_outsize = 32, 16

    key = jax.random.PRNGKey(0)
    k_s, k_h, k_p = jax.random.split(key, 3)
    s = jax.random.normal(k_s, (B, T, state_size), jnp.float32)
    h0 = jax.random.normal(k_h, (2, B, rnn_outsize), jnp.float32)
    params = init_params(k_p, state_size, command_size, rnn_insize, rnn_outsize)

    out = jax.block_until_ready(commander_actor_forward(s, h0, params))
    ref = jax.block_until_ready(reference_forward(s, h0, params))

    assert out.shape == (B, T, command_size), out.shape
    assert jnp.allclose(out, ref, atol=1e-4, rtol=1e-4), (out, ref)

    print("KERNEL_OK")
</pallas_src>

<mosaic_0001>
module attributes {stable_mosaic.version = 11 : i64} {
  func.func @commander_actor_kernel(%arg0: memref<64x24xf32, #tpu.memory_space<vmem>>, %arg1: memref<8x32xf32, #tpu.memory_space<vmem>>, %arg2: memref<24x64xf32, #tpu.memory_space<vmem>>, %arg3: memref<64x32xf32, #tpu.memory_space<vmem>>, %arg4: memref<32x32xf32, #tpu.memory_space<vmem>>, %arg5: memref<32x4xf32, #tpu.memory_space<vmem>>, %arg6: memref<3x64xf32, #tpu.memory_space<vmem>>, %arg7: memref<64x4xf32, #tpu.memory_space<vmem>>, %arg8: memref<64x32xf32, #tpu.memory_space<vmem>>, %arg9: memref<64x32xf32, #tpu.memory_space<vmem>>) attributes {dimension_semantics = [], scalar_prefetch = 0 : i64, scratch_operands = 2 : i64, tpu.core_type = #tpu.core_type<tc>} {
    %c0 = arith.constant 0 : index
    %c0_0 = arith.constant 0 : index
    %0 = vector.load %arg6[%c0, %c0_0] : memref<3x64xf32, #tpu.memory_space<vmem>>, vector<1x64xf32>
    %c1 = arith.constant 1 : index
    %c0_1 = arith.constant 0 : index
    %1 = vector.load %arg6[%c1, %c0_1] : memref<3x64xf32, #tpu.memory_space<vmem>>, vector<1x32xf32>
    %c2 = arith.constant 2 : index
    %c0_2 = arith.constant 0 : index
    %2 = vector.load %arg6[%c2, %c0_2] : memref<3x64xf32, #tpu.memory_space<vmem>>, vector<1x4xf32>
    %c0_3 = arith.constant 0 : index
    %c0_4 = arith.constant 0 : index
    %3 = vector.load %arg0[%c0_3, %c0_4] : memref<64x24xf32, #tpu.memory_space<vmem>>, vector<64x24xf32>
    %c0_5 = arith.constant 0 : index
    %c0_6 = arith.constant 0 : index
    %4 = vector.load %arg2[%c0_5, %c0_6] : memref<24x64xf32, #tpu.memory_space<vmem>>, vector<24x64xf32>
    %cst = arith.constant dense<0.000000e+00> : vector<64x64xf32>
    %5 = tpu.matmul %3, %4, %cst {dimension_numbers = #tpu.dot_dimension_numbers<[1], [0], [0], [1], [0, 0, 1, 1], [], []>} : vector<64x24xf32>, vector<24x64xf32>, vector<64x64xf32> -> vector<64x64xf32>
    %6 = vector.broadcast %0 : vector<1x64xf32> to vector<64x64xf32>
    %7 = arith.addf %5, %6 : vector<64x64xf32>
    %cst_7 = arith.constant 0.000000e+00 : f32
    %8 = vector.broadcast %cst_7 : f32 to vector<64x64xf32>
    %9 = arith.maximumf %7, %8 : vector<64x64xf32>
    %c0_8 = arith.constant 0 : index
    %c0_9 = arith.constant 0 : index
    %10 = vector.load %arg3[%c0_8, %c0_9] : memref<64x32xf32, #tpu.memory_space<vmem>>, vector<64x32xf32>
    %cst_10 = arith.constant dense<0.000000e+00> : vector<64x32xf32>
    %11 = tpu.matmul %9, %10, %cst_10 {dimension_numbers = #tpu.dot_dimension_numbers<[1], [0], [0], [1], [0, 0, 1, 1], [], []>} : vector<64x64xf32>, vector<64x32xf32>, vector<64x32xf32> -> vector<64x32xf32>
    %12 = vector.broadcast %1 : vector<1x32xf32> to vector<64x32xf32>
    %13 = arith.addf %11, %12 : vector<64x32xf32>
    %c0_11 = arith.constant 0 : index
    %c0_12 = arith.constant 0 : index
    %14 = vector.load %arg8[%c0_11, %c0_12] : memref<64x32xf32, #tpu.memory_space<vmem>>, vector<64x32xf32>
    tpu.vector_store %arg8[%c0_11, %c0_12], %13 {strides = array<i32>} : memref<64x32xf32, #tpu.memory_space<vmem>>, vector<64x32xf32>,
    %c0_13 = arith.constant 0 : index
    %c0_14 = arith.constant 0 : index
    %15 = vector.load %arg4[%c0_13, %c0_14] : memref<32x32xf32, #tpu.memory_space<vmem>>, vector<32x32xf32>
    %c0_15 = arith.constant 0 : index
    %c0_16 = arith.constant 0 : index
    %16 = vector.load %arg1[%c0_15, %c0_16] : memref<8x32xf32, #tpu.memory_space<vmem>>, vector<8x32xf32>
    %c0_i32 = arith.constant 0 : i32
    %c8_i32 = arith.constant 8 : i32
    %17 = arith.muli %c0_i32, %c8_i32 : i32
    %18 = tpu.assume_multiple %17, 8 : i32
    %c7_i32 = arith.constant 7 : i32
    %19 = arith.subi %c7_i32, %c0_i32 : i32
    %c8_i32_17 = arith.constant 8 : i32
    %20 = arith.muli %19, %c8_i32_17 : i32
    %21 = tpu.assume_multiple %20, 8 : i32
    %cst_18 = arith.constant dense<0.000000e+00> : vector<8x32xf32>
    %22 = tpu.matmul %16, %15, %cst_18 {dimension_numbers = #tpu.dot_dimension_numbers<[1], [0], [0], [1], [0, 0, 1, 1], [], []>} : vector<8x32xf32>, vector<32x32xf32>, vector<8x32xf32> -> vector<8x32xf32>
    %23 = arith.index_cast %18 : i32 to index
    %c0_19 = arith.constant 0 : index
    %24 = vector.load %arg8[%23, %c0_19] : memref<64x32xf32, #tpu.memory_space<vmem>>, vector<8x32xf32>
    %25 = arith.addf %22, %24 : vector<8x32xf32>
    %26 = math.tanh %25 : vector<8x32xf32>
    %27 = vector.extract_strided_slice %26 {offsets = [0, 0], sizes = [8, 16], strides = [1, 1]} : vector<8x32xf32> to vector<8x16xf32>
    %28 = arith.index_cast %18 : i32 to index
    %c0_20 = arith.constant 0 : index
    %29 = vector.load %arg9[%28, %c0_20] : memref<64x32xf32, #tpu.memory_space<vmem>>, vector<8x16xf32>
    tpu.vector_store %arg9[%28, %c0_20], %27 {strides = array<i32>} : memref<64x32xf32, #tpu.memory_space<vmem>>, vector<8x16xf32>,
    %30 = vector.extract_strided_slice %26 {offsets = [0, 16], sizes = [8, 16], strides = [1, 1]} : vector<8x32xf32> to vector<8x16xf32>
    %31 = arith.index_cast %21 : i32 to index
    %c16 = arith.constant 16 : index
    %32 = vector.load %arg9[%31, %c16] : memref<64x32xf32, #tpu.memory_space<vmem>>, vector<8x16xf32>
    tpu.vector_store %arg9[%31, %c16], %30 {strides = array<i32>} : memref<64x32xf32, #tpu.memory_space<vmem>>, vector<8x16xf32>,
    %c1_i32 = arith.constant 1 : i32
    %c8_i32_21 = arith.constant 8 : i32
    %33 = arith.muli %c1_i32, %c8_i32_21 : i32
    %34 = tpu.assume_multiple %33, 8 : i32
    %c7_i32_22 = arith.constant 7 : i32
    %35 = arith.subi %c7_i32_22, %c1_i32 : i32
    %c8_i32_23 = arith.constant 8 : i32
    %36 = arith.muli %35, %c8_i32_23 : i32
    %37 = tpu.assume_multiple %36, 8 : i32
    %cst_24 = arith.constant dense<0.000000e+00> : vector<8x32xf32>
    %38 = tpu.matmul %26, %15, %cst_24 {dimension_numbers = #tpu.dot_dimension_numbers<[1], [0], [0], [1], [0, 0, 1, 1], [], []>} : vector<8x32xf32>, vector<32x32xf32>, vector<8x32xf32> -> vector<8x32xf32>
    %39 = arith.index_cast %34 : i32 to index
    %c0_25 = arith.constant 0 : index
    %40 = vector.load %arg8[%39, %c0_25] : memref<64x32xf32, #tpu.memory_space<vmem>>, vector<8x32xf32>
    %41 = arith.addf %38, %40 : vector<8x32xf32>
    %42 = math.tanh %41 : vector<8x32xf32>
    %43 = vector.extract_strided_slice %42 {offsets = [0, 0], sizes = [8, 16], strides = [1, 1]} : vector<8x32xf32> to vector<8x16xf32>
    %44 = arith.index_cast %34 : i32 to index
    %c0_26 = arith.constant 0 : index
    %45 = vector.load %arg9[%44, %c0_26] : memref<64x32xf32, #tpu.memory_space<vmem>>, vector<8x16xf32>
    tpu.vector_store %arg9[%44, %c0_26], %43 {strides = array<i32>} : memref<64x32xf32, #tpu.memory_space<vmem>>, vector<8x16xf32>,
    %46 = vector.extract_strided_slice %42 {offsets = [0, 16], sizes = [8, 16], strides = [1, 1]} : vector<8x32xf32> to vector<8x16xf32>
    %47 = arith.index_cast %37 : i32 to index
    %c16_27 = arith.constant 16 : index
    %48 = vector.load %arg9[%47, %c16_27] : memref<64x32xf32, #tpu.memory_space<vmem>>, vector<8x16xf32>
    tpu.vector_store %arg9[%47, %c16_27], %46 {strides = array<i32>} : memref<64x32xf32, #tpu.memory_space<vmem>>, vector<8x16xf32>,
    %c2_i32 = arith.constant 2 : i32
    %c8_i32_28 = arith.constant 8 : i32
    %49 = arith.muli %c2_i32, %c8_i32_28 : i32
    %50 = tpu.assume_multiple %49, 8 : i32
    %c7_i32_29 = arith.constant 7 : i32
    %51 = arith.subi %c7_i32_29, %c2_i32 : i32
    %c8_i32_30 = arith.constant 8 : i32
    %52 = arith.muli %51, %c8_i32_30 : i32
    %53 = tpu.assume_multiple %52, 8 : i32
    %cst_31 = arith.constant dense<0.000000e+00> : vector<8x32xf32>
    %54 = tpu.matmul %42, %15, %cst_31 {dimension_numbers = #tpu.dot_dimension_numbers<[1], [0], [0], [1], [0, 0, 1, 1], [], []>} : vector<8x32xf32>, vector<32x32xf32>, vector<8x32xf32> -> vector<8x32xf32>
    %55 = arith.index_cast %50 : i32 to index
    %c0_32 = arith.constant 0 : index
    %56 = vector.load %arg8[%55, %c0_32] : memref<64x32xf32, #tpu.memory_space<vmem>>, vector<8x32xf32>
    %57 = arith.addf %54, %56 : vector<8x32xf32>
    %58 = math.tanh %57 : vector<8x32xf32>
    %59 = vector.extract_strided_slice %58 {offsets = [0, 0], sizes = [8, 16], strides = [1, 1]} : vector<8x32xf32> to vector<8x16xf32>
    %60 = arith.index_cast %50 : i32 to index
    %c0_33 = arith.constant 0 : index
    %61 = vector.load %arg9[%60, %c0_33] : memref<64x32xf32, #tpu.memory_space<vmem>>, vector<8x16xf32>
    tpu.vector_store %arg9[%60, %c0_33], %59 {strides = array<i32>} : memref<64x32xf32, #tpu.memory_space<vmem>>, vector<8x16xf32>,
    %62 = vector.extract_strided_slice %58 {offsets = [0, 16], sizes = [8, 16], strides = [1, 1]} : vector<8x32xf32> to vector<8x16xf32>
    %63 = arith.index_cast %53 : i32 to index
    %c16_34 = arith.constant 16 : index
    %64 = vector.load %arg9[%63, %c16_34] : memref<64x32xf32, #tpu.memory_space<vmem>>, vector<8x16xf32>
    tpu.vector_store %arg9[%63, %c16_34], %62 {strides = array<i32>} : memref<64x32xf32, #tpu.memory_space<vmem>>, vector<8x16xf32>,
    %c3_i32 = arith.constant 3 : i32
    %c8_i32_35 = arith.constant 8 : i32
    %65 = arith.muli %c3_i32, %c8_i32_35 : i32
    %66 = tpu.assume_multiple %65, 8 : i32
    %c7_i32_36 = arith.constant 7 : i32
    %67 = arith.subi %c7_i32_36, %c3_i32 : i32
    %c8_i32_37 = arith.constant 8 : i32
    %68 = arith.muli %67, %c8_i32_37 : i32
    %69 = tpu.assume_multiple %68, 8 : i32
    %cst_38 = arith.constant dense<0.000000e+00> : vector<8x32xf32>
    %70 = tpu.matmul %58, %15, %cst_38 {dimension_numbers = #tpu.dot_dimension_numbers<[1], [0], [0], [1], [0, 0, 1, 1], [], []>} : vector<8x32xf32>, vector<32x32xf32>, vector<8x32xf32> -> vector<8x32xf32>
    %71 = arith.index_cast %66 : i32 to index
    %c0_39 = arith.constant 0 : index
    %72 = vector.load %arg8[%71, %c0_39] : memref<64x32xf32, #tpu.memory_space<vmem>>, vector<8x32xf32>
    %73 = arith.addf %70, %72 : vector<8x32xf32>
    %74 = math.tanh %73 : vector<8x32xf32>
    %75 = vector.extract_strided_slice %74 {offsets = [0, 0], sizes = [8, 16], strides = [1, 1]} : vector<8x32xf32> to vector<8x16xf32>
    %76 = arith.index_cast %66 : i32 to index
    %c0_40 = arith.constant 0 : index
    %77 = vector.load %arg9[%76, %c0_40] : memref<64x32xf32, #tpu.memory_space<vmem>>, vector<8x16xf32>
    tpu.vector_store %arg9[%76, %c0_40], %75 {strides = array<i32>} : memref<64x32xf32, #tpu.memory_space<vmem>>, vector<8x16xf32>,
    %78 = vector.extract_strided_slice %74 {offsets = [0, 16], sizes = [8, 16], strides = [1, 1]} : vector<8x32xf32> to vector<8x16xf32>
    %79 = arith.index_cast %69 : i32 to index
    %c16_41 = arith.constant 16 : index
    %80 = vector.load %arg9[%79, %c16_41] : memref<64x32xf32, #tpu.memory_space<vmem>>, vector<8x16xf32>
    tpu.vector_store %arg9[%79, %c16_41], %78 {strides = array<i32>} : memref<64x32xf32, #tpu.memory_space<vmem>>, vector<8x16xf32>,
    %c4_i32 = arith.constant 4 : i32
    %c8_i32_42 = arith.constant 8 : i32
    %81 = arith.muli %c4_i32, %c8_i32_42 : i32
    %82 = tpu.assume_multiple %81, 8 : i32
    %c7_i32_43 = arith.constant 7 : i32
    %83 = arith.subi %c7_i32_43, %c4_i32 : i32
    %c8_i32_44 = arith.constant 8 : i32
    %84 = arith.muli %83, %c8_i32_44 : i32
    %85 = tpu.assume_multiple %84, 8 : i32
    %cst_45 = arith.constant dense<0.000000e+00> : vector<8x32xf32>
    %86 = tpu.matmul %74, %15, %cst_45 {dimension_numbers = #tpu.dot_dimension_numbers<[1], [0], [0], [1], [0, 0, 1, 1], [], []>} : vector<8x32xf32>, vector<32x32xf32>, vector<8x32xf32> -> vector<8x32xf32>
    %87 = arith.index_cast %82 : i32 to index
    %c0_46 = arith.constant 0 : index
    %88 = vector.load %arg8[%87, %c0_46] : memref<64x32xf32, #tpu.memory_space<vmem>>, vector<8x32xf32>
    %89 = arith.addf %86, %88 : vector<8x32xf32>
    %90 = math.tanh %89 : vector<8x32xf32>
    %91 = vector.extract_strided_slice %90 {offsets = [0, 0], sizes = [8, 16], strides = [1, 1]} : vector<8x32xf32> to vector<8x16xf32>
    %92 = arith.index_cast %82 : i32 to index
    %c0_47 = arith.constant 0 : index
    %93 = vector.load %arg9[%92, %c0_47] : memref<64x32xf32, #tpu.memory_space<vmem>>, vector<8x16xf32>
    tpu.vector_store %arg9[%92, %c0_47], %91 {strides = array<i32>} : memref<64x32xf32, #tpu.memory_space<vmem>>, vector<8x16xf32>,
    %94 = vector.extract_strided_slice %90 {offsets = [0, 16], sizes = [8, 16], strides = [1, 1]} : vector<8x32xf32> to vector<8x16xf32>
    %95 = arith.index_cast %85 : i32 to index
    %c16_48 = arith.constant 16 : index
    %96 = vector.load %arg9[%95, %c16_48] : memref<64x32xf32, #tpu.memory_space<vmem>>, vector<8x16xf32>
    tpu.vector_store %arg9[%95, %c16_48], %94 {strides = array<i32>} : memref<64x32xf32, #tpu.memory_space<vmem>>, vector<8x16xf32>,
    %c5_i32 = arith.constant 5 : i32
    %c8_i32_49 = arith.constant 8 : i32
    %97 = arith.muli %c5_i32, %c8_i32_49 : i32
    %98 = tpu.assume_multiple %97, 8 : i32
    %c7_i32_50 = arith.constant 7 : i32
    %99 = arith.subi %c7_i32_50, %c5_i32 : i32
    %c8_i32_51 = arith.constant 8 : i32
    %100 = arith.muli %99, %c8_i32_51 : i32
    %101 = tpu.assume_multiple %100, 8 : i32
    %cst_52 = arith.constant dense<0.000000e+00> : vector<8x32xf32>
    %102 = tpu.matmul %90, %15, %cst_52 {dimension_numbers = #tpu.dot_dimension_numbers<[1], [0], [0], [1], [0, 0, 1, 1], [], []>} : vector<8x32xf32>, vector<32x32xf32>, vector<8x32xf32> -> vector<8x32xf32>
    %103 = arith.index_cast %98 : i32 to index
    %c0_53 = arith.constant 0 : index
    %104 = vector.load %arg8[%103, %c0_53] : memref<64x32xf32, #tpu.memory_space<vmem>>, vector<8x32xf32>
    %105 = arith.addf %102, %104 : vector<8x32xf32>
    %106 = math.tanh %105 : vector<8x32xf32>
    %107 = vector.extract_strided_slice %106 {offsets = [0, 0], sizes = [8, 16], strides = [1, 1]} : vector<8x32xf32> to vector<8x16xf32>
    %108 = arith.index_cast %98 : i32 to index
    %c0_54 = arith.constant 0 : index
    %109 = vector.load %arg9[%108, %c0_54] : memref<64x32xf32, #tpu.memory_space<vmem>>, vector<8x16xf32>
    tpu.vector_store %arg9[%108, %c0_54], %107 {strides = array<i32>} : memref<64x32xf32, #tpu.memory_space<vmem>>, vector<8x16xf32>,
    %110 = vector.extract_strided_slice %106 {offsets = [0, 16], sizes = [8, 16], strides = [1, 1]} : vector<8x32xf32> to vector<8x16xf32>
    %111 = arith.index_cast %101 : i32 to index
    %c16_55 = arith.constant 16 : index
    %112 = vector.load %arg9[%111, %c16_55] : memref<64x32xf32, #tpu.memory_space<vmem>>, vector<8x16xf32>
    tpu.vector_store %arg9[%111, %c16_55], %110 {strides = array<i32>} : memref<64x32xf32, #tpu.memory_space<vmem>>, vector<8x16xf32>,
    %c6_i32 = arith.constant 6 : i32
    %c8_i32_56 = arith.constant 8 : i32
    %113 = arith.muli %c6_i32, %c8_i32_56 : i32
    %114 = tpu.assume_multiple %113, 8 : i32
    %c7_i32_57 = arith.constant 7 : i32
    %115 = arith.subi %c7_i32_57, %c6_i32 : i32
    %c8_i32_58 = arith.constant 8 : i32
    %116 = arith.muli %115, %c8_i32_58 : i32
    %117 = tpu.assume_multiple %116, 8 : i32
    %cst_59 = arith.constant dense<0.000000e+00> : vector<8x32xf32>
    %118 = tpu.matmul %106, %15, %cst_59 {dimension_numbers = #tpu.dot_dimension_numbers<[1], [0], [0], [1], [0, 0, 1, 1], [], []>} : vector<8x32xf32>, vector<32x32xf32>, vector<8x32xf32> -> vector<8x32xf32>
    %119 = arith.index_cast %114 : i32 to index
    %c0_60 = arith.constant 0 : index
    %120 = vector.load %arg8[%119, %c0_60] : memref<64x32xf32, #tpu.memory_space<vmem>>, vector<8x32xf32>
    %121 = arith.addf %118, %120 : vector<8x32xf32>
    %122 = math.tanh %121 : vector<8x32xf32>
    %123 = vector.extract_strided_slice %122 {offsets = [0, 0], sizes = [8, 16], strides = [1, 1]} : vector<8x32xf32> to vector<8x16xf32>
    %124 = arith.index_cast %114 : i32 to index
    %c0_61 = arith.constant 0 : index
    %125 = vector.load %arg9[%124, %c0_61] : memref<64x32xf32, #tpu.memory_space<vmem>>, vector<8x16xf32>
    tpu.vector_store %arg9[%124, %c0_61], %123 {strides = array<i32>} : memref<64x32xf32, #tpu.memory_space<vmem>>, vector<8x16xf32>,
    %126 = vector.extract_strided_slice %122 {offsets = [0, 16], sizes = [8, 16], strides = [1, 1]} : vector<8x32xf32> to vector<8x16xf32>
    %127 = arith.index_cast %117 : i32 to index
    %c16_62 = arith.constant 16 : index
    %128 = vector.load %arg9[%127, %c16_62] : memref<64x32xf32, #tpu.memory_space<vmem>>, vector<8x16xf32>
    tpu.vector_store %arg9[%127, %c16_62], %126 {strides = array<i32>} : memref<64x32xf32, #tpu.memory_space<vmem>>, vector<8x16xf32>,
    %c7_i32_63 = arith.constant 7 : i32
    %c8_i32_64 = arith.constant 8 : i32
    %129 = arith.muli %c7_i32_63, %c8_i32_64 : i32
    %130 = tpu.assume_multiple %129, 8 : i32
    %c7_i32_65 = arith.constant 7 : i32
    %131 = arith.subi %c7_i32_65, %c7_i32_63 : i32
    %c8_i32_66 = arith.constant 8 : i32
    %132 = arith.muli %131, %c8_i32_66 : i32
    %133 = tpu.assume_multiple %132, 8 : i32
    %cst_67 = arith.constant dense<0.000000e+00> : vector<8x32xf32>
    %134 = tpu.matmul %122, %15, %cst_67 {dimension_numbers = #tpu.dot_dimension_numbers<[1], [0], [0], [1], [0, 0, 1, 1], [], []>} : vector<8x32xf32>, vector<32x32xf32>, vector<8x32xf32> -> vector<8x32xf32>
    %135 = arith.index_cast %130 : i32 to index
    %c0_68 = arith.constant 0 : index
    %136 = vector.load %arg8[%135, %c0_68] : memref<64x32xf32, #tpu.memory_space<vmem>>, vector<8x32xf32>
    %137 = arith.addf %134, %136 : vector<8x32xf32>
    %138 = math.tanh %137 : vector<8x32xf32>
    %139 = vector.extract_strided_slice %138 {offsets = [0, 0], sizes = [8, 16], strides = [1, 1]} : vector<8x32xf32> to vector<8x16xf32>
    %140 = arith.index_cast %130 : i32 to index
    %c0_69 = arith.constant 0 : index
    %141 = vector.load %arg9[%140, %c0_69] : memref<64x32xf32, #tpu.memory_space<vmem>>, vector<8x16xf32>
    tpu.vector_store %arg9[%140, %c0_69], %139 {strides = array<i32>} : memref<64x32xf32, #tpu.memory_space<vmem>>, vector<8x16xf32>,
    %142 = vector.extract_strided_slice %138 {offsets = [0, 16], sizes = [8, 16], strides = [1, 1]} : vector<8x32xf32> to vector<8x16xf32>
    %143 = arith.index_cast %133 : i32 to index
    %c16_70 = arith.constant 16 : index
    %144 = vector.load %arg9[%143, %c16_70] : memref<64x32xf32, #tpu.memory_space<vmem>>, vector<8x16xf32>
    tpu.vector_store %arg9[%143, %c16_70], %142 {strides = array<i32>} : memref<64x32xf32, #tpu.memory_space<vmem>>, vector<8x16xf32>,
    %c8_i32_71 = arith.constant 8 : i32
    %c0_72 = arith.constant 0 : index
    %c0_73 = arith.constant 0 : index
    %145 = vector.load %arg9[%c0_72, %c0_73] : memref<64x32xf32, #tpu.memory_space<vmem>>, vector<64x32xf32>
    %c0_74 = arith.constant 0 : index
    %c0_75 = arith.constant 0 : index
    %146 = vector.load %arg5[%c0_74, %c0_75] : memref<32x4xf32, #tpu.memory_space<vmem>>, vector<32x4xf32>
    %cst_76 = arith.constant dense<0.000000e+00> : vector<64x4xf32>
    %147 = tpu.matmul %145, %146, %cst_76 {dimension_numbers = #tpu.dot_dimension_numbers<[1], [0], [0], [1], [0, 0, 1, 1], [], []>} : vector<64x32xf32>, vector<32x4xf32>, vector<64x4xf32> -> vector<64x4xf32>
    %148 = vector.broadcast %2 : vector<1x4xf32> to vector<64x4xf32>
    %149 = arith.addf %147, %148 : vector<64x4xf32>
    %150 = math.tanh %149 : vector<64x4xf32>
    %c0_77 = arith.constant 0 : index
    %c0_78 = arith.constant 0 : index
    %151 = vector.load %arg7[%c0_77, %c0_78] : memref<64x4xf32, #tpu.memory_space<vmem>>, vector<64x4xf32>
    tpu.vector_store %arg7[%c0_77, %c0_78], %150 {strides = array<i32>} : memref<64x4xf32, #tpu.memory_space<vmem>>, vector<64x4xf32>,
    return
  }
}

</mosaic_0001>

<bundles_post_ra>
// kernel: tpu_custom_call.1
= control target key start
LH: loop header
LB: loop body
LE: loop exit
PB: predicated region body
PF: predicated region fallthrough
CT: control target
= control target key end

     0   :  { %vm44_vm0 = vcmask 195584   ;;  %v1523_v24 = vmov 0.0|0.0   ;;  %vm194_vm1 = vcmask 523264   ;;  %vm1524_vm2 = vmmov 0   ;;  %s1799_s2 = inlined_call_operand.vmem [shape: f32[24,64], index: 2, kind: input, shape index: {}]   ;;  %s1800_s0 = inlined_call_operand.vmem [shape: f32[64,24], index: 0, kind: input, shape index: {}]   ;;  %s1801_s3 = inlined_call_operand.vmem [shape: f32[64,32], index: 3, kind: input, shape index: {}]   ;;  %s1802_s6 = inlined_call_operand.vmem [shape: f32[3,64], index: 6, kind: input, shape index: {}]   ;;  %s1803_s4 = inlined_call_operand.vmem [shape: f32[32,32], index: 4, kind: input, shape index: {}]   ;;  %s1804_s1 = inlined_call_operand.vmem [shape: f32[8,32], index: 1, kind: input, shape index: {}]   ;;  %s1805_s5 = inlined_call_operand.vmem [shape: f32[32,4], index: 5, kind: input, shape index: {}]   ;;  %s1806_s7 = inlined_call_operand.vmem [shape: f32[64,4], index: 7, kind: output, shape index: {}]  }
   0x1   :  { %v37_v0 = vld [vmem:[%s1799_s2] sm:$0xff]  ;;  %v38_v1 = vld [vmem:[%s1799_s2 + $0x8] sm:$0xff]  ;;  %v39_v4 = vld [vmem:[%s1799_s2 + $0x10] sm:$0xff]  ;;  %v1525_v49 = vmov 0.0   ;;  %vm324_vm3 = vcmask 261120   ;;  %vm413_vm4 = vcmask 130048  }
   0x2   :  { %v1404_v2 = vpack.c.bf16 %v38_v1, %v37_v0  ;;  %v29_v3 = vld [vmem:[%s1800_s0] sm:$0xff]  ;;  %v183_v6 = vld [vmem:[%s1801_s3 + $0x8] sm:$0xff]  ;;  %v184_v8 = vld [vmem:[%s1801_s3 + $0x10] sm:$0xff]  ;;  %vm416_vm5 = vcmask 261248   ;;  %vm1123_vm6 = vcmask 31744  }
   0x3   :  { %1256 = vmatprep.mubr.msk.f32.mxu0 %vm44_vm0, %v29_v3  ;;  %v182_v5 = vld [vmem:[%s1801_s3] sm:$0xff]  ;;  %v185_v9 = vld [vmem:[%s1801_s3 + $0x18] sm:$0xff]  ;;  %v30_v11 = vld [vmem:[%s1800_s0 + $0x8] sm:$0xff] }
   0x4   :  { %1405 = vmatprep.subr.bf16.mxu0 %v1404_v2  ;;  %v1408_v7 = vpack.c.bf16 %v183_v6, %v182_v5  ;;  %v1412_v10 = vpack.c.bf16 %v185_v9, %v184_v8  ;;  %v31_v12 = vld [vmem:[%s1800_s0 + $0x10] sm:$0xff]  ;;  %v186_v13 = vld [vmem:[%s1801_s3 + $0x20] sm:$0xff]  ;;  %v187_v14 = vld [vmem:[%s1801_s3 + $0x28] sm:$0xff] }
   0x5   :  { %1407 = vmatpush3.bf16.msra.mxu0 %v1404_v2  ;;  %v32_v15 = vld [vmem:[%s1800_s0 + $0x18] sm:$0xff]  ;;  %v1416_v16 = vpack.c.bf16 %v187_v14, %v186_v13  ;;  %v33_v17 = vld [vmem:[%s1800_s0 + $0x20] sm:$0xff]  ;;  %v34_v18 = vld [vmem:[%s1800_s0 + $0x28] sm:$0xff] }
   0x6   :  { %1254 = vmatprep.subr.mxu0 %v39_v4  ;;  %1480 = vmatprep.subr.bf16.mxu1 %v1408_v7  ;;  %v35_v19 = vld [vmem:[%s1800_s0 + $0x30] sm:$0xff]  ;;  %v36_v20 = vld [vmem:[%s1800_s0 + $0x38] sm:$0xff]  ;;  %v1136_v25 = vld [vmem:[%s1802_s6] ss:$0 sm:$0xff] }
   0x7   :  { %1484 = vmatpush3.bf16.msra.mxu1 %v1408_v7  ;;  %v188_v21 = vld [vmem:[%s1801_s3 + $0x30] sm:$0xff]  ;;  %v189_v22 = vld [vmem:[%s1801_s3 + $0x38] sm:$0xff]  ;;  %v333_v29 = vld [vmem:[%s1803_s4] sm:$0xff] }
   0x8   :  { %1481 = vmatprep.subr.bf16.mxu1 %v1412_v10  ;;  %v1420_v23 = vpack.c.bf16 %v189_v22, %v188_v21  ;;  %v334_v30 = vld [vmem:[%s1803_s4 + $0x8] sm:$0xff]  ;;  %v335_v38 = vld [vmem:[%s1803_s4 + $0x10] sm:$0xff]  ;;  %v336_v39 = vld [vmem:[%s1803_s4 + $0x18] sm:$0xff] }
   0x9   :  { %1255 = vmatpush3.msra.mxu0 %v39_v4  ;;  %v1642_v34 = vpack.c.bf16 %v334_v30, %v333_v29  ;;  %v1653_v43 = vpack.c.bf16 %v336_v39, %v335_v38  ;;  %v337_v50 = vld [vmem:[%s1804_s1] sm:$0xff] }
   0xa   :  { %1257 = vmatmul.mubr.msk.f32.vlgmr.msra.gmra.mrb[0].mxu0 %vm44_vm0, %v30_v11  ;;  %1409 = vmatprep.subr.bf16.mxu0 %v1408_v7  ;;  %v1145_v58 = vld [vmem:[%s1802_s6 + $0x1] ss:$0 sm:$0xff] }
   0xb   :  { %1259 = vmatprep.mubr.msk.f32.mxu0 %vm44_vm0, %v31_v12  ;;  %1411 = vmatpush3.bf16.msra.mxu0 %v1408_v7 }
   0xc   :  { %1413 = vmatprep.subr.bf16.mxu0 %v1412_v10  ;;  %1485 = vmatpush3.bf16.msra.mxu1 %v1412_v10 }
   0xd   :  { %1482 = vmatprep.subr.bf16.mxu1 %v1416_v16 }
   0xe   :  { %1260 = vmatmul.mubr.msk.f32.gmra.mrb[2].mxu0 %vm44_vm0, %v32_v15 }
   0xf   :  { %1262 = vmatprep.mubr.msk.f32.mxu0 %vm44_vm0, %v33_v17  ;;  %1415 = vmatpush3.bf16.msra.mxu0 %v1412_v10 }
  0x10   :  { %1417 = vmatprep.subr.bf16.mxu0 %v1416_v16  ;;  %1486 = vmatpush3.bf16.msra.mxu1 %v1416_v16 }
  0x11   :  { %1483 = vmatprep.subr.bf16.mxu1 %v1420_v23 }
  0x12   :  { %1263 = vmatmul.mubr.msk.f32.gmra.mrb[4].mxu0 %vm44_vm0, %v34_v18 }
  0x13   :  { %1265 = vmatprep.mubr.msk.f32.mxu0 %vm44_vm0, %v35_v19  ;;  %1419 = vmatpush3.bf16.msra.mxu0 %v1416_v16 }
  0x14   :  { %1421 = vmatprep.subr.bf16.mxu0 %v1420_v23  ;;  %1487 = vmatpush3.bf16.msra.mxu1 %v1420_v23 }
  0x15   :  { %1436 = vmatprep.subr.bf16.mxu1 %v1523_v24 }
  0x16   :  { %1266 = vmatmul.mubr.msk.f32.gmra.mrb[6].mxu0 %vm44_vm0, %v36_v20 }
  0x17   :  { %1423 = vmatpush3.bf16.msra.mxu0 %v1420_v23 }
  0x18   :  { %1424 = vmatprep.subr.bf16.mxu0 %v1523_v24 }
  0xdd   :  { %v1258_v26 = vpop.f32.mrb[0].mxu0 }
  0xde   :  { %v141_v27 = vadd.f32 %v1258_v26, %v1136_v25  ;;  %v135_v28 = vpop.f32.mrb[1].mxu0 }
  0xdf   :  { %v136_v31 = vadd.f32 %v1136_v25, %v135_v28 }
  0xe0   :  { %v175_v35 = vmax.f32 %v141_v27, 0.0 }
  0xe1   :  { %v174_v32 = vmax.f32 %v136_v31, 0.0  ;;  %v1261_v33 = vpop.f32.mrb[2].mxu0 }
  0xe2   :  { %v151_v36 = vadd.f32 %v1261_v33, %v1136_v25  ;;  %v145_v37 = vpop.f32.mrb[3].mxu0 }
  0xe3   :  { %v146_v40 = vadd.f32 %v1136_v25, %v145_v37  ;;  %1284 = vmatprep.mubr.msk.f32.mxu0 %vm194_vm1, %v174_v32 }
  0xe4   :  { %v177_v41 = vmax.f32 %v151_v36, 0.0  ;;  %1285 = vmatmul.mubr.msk.f32.vlgmr.msra.gmra.mrb[8].mxu0 %vm194_vm1, %v175_v35 }
  0xe5   :  { %v176_v42 = vmax.f32 %v146_v40, 0.0  ;;  %1426 = vmatpush3.bf16.msra.mxu0 %v1642_v34  ;;  %v1264_v44 = vpop.f32.mrb[4].mxu0 }
  0xe6   :  { %1427 = vmatprep.subr.bf16.mxu0 %v1523_v24  ;;  %v161_v45 = vadd.f32 %v1264_v44, %v1136_v25  ;;  %v155_v46 = vpop.f32.mrb[5].mxu0 }
  0xe7   :  { %1287 = vmatprep.mubr.msk.f32.mxu0 %vm194_vm1, %v176_v42  ;;  %v156_v47 = vadd.f32 %v1136_v25, %v155_v46 }
  0xe8   :  { %1288 = vmatmul.mubr.msk.f32.gmra.mrb[10].mxu0 %vm194_vm1, %v177_v41  ;;  %v179_v48 = vmax.f32 %v161_v45, 0.0 }
  0xe9   :  { %1429 = vmatpush3.bf16.msra.mxu0 %v1653_v43  ;;  %1304 = vmatprep.mubr.msk.f32.mxu0 %vm1524_vm2, %v1525_v49  ;;  %v178_v51 = vmax.f32 %v156_v47, 0.0  ;;  %v1267_v52 = vpop.f32.mrb[6].mxu0  ;;  %v979_v47 = vld [vmem:[%s1805_s5 + $0x8] sm:$0xff] }
  0xea   :  { %1430 = vmatprep.subr.bf16.mxu0 %v1523_v24  ;;  %v171_v53 = vadd.f32 %v1267_v52, %v1136_v25  ;;  %v165_v54 = vpop.f32.mrb[7].mxu0 }
  0xeb   :  { %1290 = vmatprep.mubr.msk.f32.mxu1 %vm194_vm1, %v178_v51  ;;  %v166_v55 = vadd.f32 %v1136_v25, %v165_v54 }
  0xec   :  { %1305 = vmatmul.mubr.msk.f32.vlgmr.msra.gmra.mrb[12].mxu0 %vm324_vm3, %v337_v50  ;;  %1291 = vmatmul.mubr.msk.f32.vlgmr.msra.gmra.mrb[0].mxu1 %vm194_vm1, %v179_v48  ;;  %v181_v56 = vmax.f32 %v171_v53, 0.0  ;;  %v981_v50 = vld [vmem:[%s1805_s5 + $0x18] sm:$0xff] }
  0xed   :  { %1432 = vmatpush3.bf16.msra.mxu0 %v1642_v34  ;;  %1315 = vmatprep.mubr.msk.f32.mxu0 %vm1524_vm2, %v1525_v49  ;;  %v180_v57 = vmax.f32 %v166_v55, 0.0 }
  0xee   :  { %1433 = vmatprep.subr.bf16.mxu0 %v1523_v24  ;;  %1438 = vmatpush3.bf16.msra.mxu1 %v1642_v34 }
  0xef   :  { %1439 = vmatprep.subr.bf16.mxu1 %v1523_v24  ;;  %1293 = vmatprep.mubr.msk.f32.mxu1 %vm194_vm1, %v180_v57 }
  0xf0   :  { %1294 = vmatmul.mubr.msk.f32.gmra.mrb[2].mxu1 %vm194_vm1, %v181_v56 }
  0xf1   :  { %1435 = vmatpush3.bf16.msra.mxu0 %v1653_v43  ;;  %1326 = vmatprep.mubr.msk.f32.mxu1 %vm1524_vm2, %v1525_v49 }
  0xf2   :  { %1441 = vmatpush3.bf16.msra.mxu1 %v1653_v43  ;;  %1442 = vmatprep.subr.bf16.mxu0 %v1523_v24 }
  0xf3   :  { %1448 = vmatprep.subr.bf16.mxu1 %v1523_v24 }
 0x1b7   :  { %v1286_v59 = vpop.f32.mrb[8].mxu0 }
 0x1b8   :  { %v291_v60 = vadd.f32 %v1286_v59, %v1145_v58  ;;  %v285_v61 = vpop.f32.mrb[9].mxu0 }
 0x1b9   :  { %v286_v62 = vadd.f32 %v1145_v58, %v285_v61 }
 0x1ba   :  { %326 = vst.msk [vmem:[#allocation2 + $0x8] sm:$0xff] %vm324_vm3, %v291_v60 }
 0x1bb   :  { %325 = vst.msk [vmem:[#allocation2] sm:$0xff] %vm324_vm3, %v286_v62  ;;  %v1289_v63 = vpop.f32.mrb[10].mxu0 }
 0x1bc   :  { %v301_v0 = vadd.f32 %v1289_v63, %v1145_v58  ;;  %v295_v1 = vpop.f32.mrb[11].mxu0 }
 0x1bd   :  { %v296_v2 = vadd.f32 %v1145_v58, %v295_v1  ;;  %v1162_v1 = vld [vmem:[%s1802_s6 + $0x2] ss:$0 sm:$0xff] }
 0x1be   :  { %328 = vst.msk [vmem:[#allocation2 + $0x18] sm:$0xff] %vm324_vm3, %v301_v0 }
 0x1bf   :  { %327 = vst.msk [vmem:[#allocation2 + $0x10] sm:$0xff] %vm324_vm3, %v296_v2  ;;  %v408_v3 = vpop.f32.mrb[12].mxu0  ;;  %v1292_v4 = vpop.f32.mrb[0].mxu1 }
 0x1c0   :  { %v1306_v5 = vpop.f32.mrb[13].mxu0  ;;  %v311_v6 = vadd.f32 %v1292_v4, %v1145_v58  ;;  %v305_v7 = vpop.f32.mrb[1].mxu1 }
 0x1c1   :  { %v306_v8 = vadd.f32 %v1145_v58, %v305_v7  ;;  %v419_v16 = vld [vmem:[#allocation2 + $0x8] sm:$0xff] }
 0x1c2   :  { %v338_v9 = vld [vmem:[#allocation2] sm:$0xff]  ;;  %330 = vst.msk [vmem:[#allocation2 + $0x28] sm:$0xff] %vm324_vm3, %v311_v6 }
 0x1c3   :  { %v409_v10 = vadd.f32 %v408_v3, %v338_v9  ;;  %329 = vst.msk [vmem:[#allocation2 + $0x20] sm:$0xff] %vm324_vm3, %v306_v8  ;;  %v1295_v12 = vpop.f32.mrb[2].mxu1 }
 0x1c4   :  { %v321_v13 = vadd.f32 %v1295_v12, %v1145_v58  ;;  %v315_v14 = vpop.f32.mrb[3].mxu1 }
 0x1c5   :  { %1491 = vtanh.f32 %v409_v10  ;;  %v316_v15 = vadd.f32 %v1145_v58, %v315_v14  ;;  %v579_v27 = vld [vmem:[#allocation2 + $0x18] sm:$0xff] }
 0x1c6   :  { %332 = vst.msk [vmem:[#allocation2 + $0x38] sm:$0xff] %vm324_vm3, %v321_v13  ;;  %v499_v21 = vld [vmem:[#allocation2 + $0x10] sm:$0xff] }
 0x1c7   :  { %331 = vst.msk [vmem:[#allocation2 + $0x30] sm:$0xff] %vm324_vm3, %v316_v15 }
 0x1c9   :  { %v737_v38 = vld [vmem:[#allocation2 + $0x28] sm:$0xff] }
 0x1ca   :  { %v659_v32 = vld [vmem:[#allocation2 + $0x20] sm:$0xff] }
 0x1cd   :  { %v893_v52 = vld [vmem:[#allocation2 + $0x38] sm:$0xff] }
 0x1cf   :  { %v1492_v11 = vpop.eup %1491 }
 0x1d0   :  { %414 = vst.msk [vmem:[#allocation3] sm:$0xff] %vm413_vm4, %v1492_v11  ;;  %1316 = vmatmul.mubr.msk.f32.vlgmr.msra.gmra.mrb[14].mxu0 %vm324_vm3, %v1492_v11 }
 0x1d1   :  { %417 = vst.msk [vmem:[#allocation3 + $0x38] sm:$0xff] %vm416_vm5, %v1492_v11  ;;  %1444 = vmatpush3.bf16.msra.mxu0 %v1642_v34  ;;  %1337 = vmatprep.mubr.msk.f32.mxu0 %vm1524_vm2, %v1525_v49 }
 0x1d2   :  { %1445 = vmatprep.subr.bf16.mxu0 %v1523_v24 }
 0x1d5   :  { %1447 = vmatpush3.bf16.msra.mxu0 %v1653_v43 }
 0x1d6   :  { %1454 = vmatprep.subr.bf16.mxu0 %v1523_v24 }
 0x2a3   :  { %v489_v17 = vpop.f32.mrb[14].mxu0 }
 0x2a4   :  { %v490_v18 = vadd.f32 %v489_v17, %v419_v16  ;;  %v1317_v19 = vpop.f32.mrb[15].mxu0 }
 0x2a6   :  { %1493 = vtanh.f32 %v490_v18 }
 0x2b0   :  { %v1494_v20 = vpop.eup %1493 }
 0x2b1   :  { %495 = vst.msk [vmem:[#allocation3 + $0x8] sm:$0xff] %vm413_vm4, %v1494_v20  ;;  %1327 = vmatmul.mubr.msk.f32.vlgmr.msra.gmra.mrb[4].mxu1 %vm324_vm3, %v1494_v20 }
 0x2b2   :  { %497 = vst.msk [vmem:[#allocation3 + $0x30] sm:$0xff] %vm416_vm5, %v1494_v20  ;;  %1450 = vmatpush3.bf16.msra.mxu1 %v1642_v34  ;;  %1348 = vmatprep.mubr.msk.f32.mxu1 %vm1524_vm2, %v1525_v49 }
 0x2b3   :  { %1451 = vmatprep.subr.bf16.mxu1 %v1523_v24 }
 0x2b6   :  { %1453 = vmatpush3.bf16.msra.mxu1 %v1653_v43 }
 0x2b7   :  { %1460 = vmatprep.subr.bf16.mxu1 %v1523_v24 }
 0x384   :  { %v569_v22 = vpop.f32.mrb[4].mxu1 }
 0x385   :  { %v570_v23 = vadd.f32 %v569_v22, %v499_v21  ;;  %v1328_v25 = vpop.f32.mrb[5].mxu1 }
 0x387   :  { %1495 = vtanh.f32 %v570_v23 }
 0x391   :  { %v1496_v26 = vpop.eup %1495 }
 0x392   :  { %575 = vst.msk [vmem:[#allocation3 + $0x10] sm:$0xff] %vm413_vm4, %v1496_v26  ;;  %1338 = vmatmul.mubr.msk.f32.vlgmr.msra.gmra.mrb[16].mxu0 %vm324_vm3, %v1496_v26 }
 0x393   :  { %577 = vst.msk [vmem:[#allocation3 + $0x28] sm:$0xff] %vm416_vm5, %v1496_v26  ;;  %1456 = vmatpush3.bf16.msra.mxu0 %v1642_v34  ;;  %1359 = vmatprep.mubr.msk.f32.mxu0 %vm1524_vm2, %v1525_v49 }
 0x394   :  { %1457 = vmatprep.subr.bf16.mxu0 %v1523_v24 }
 0x397   :  { %1459 = vmatpush3.bf16.msra.mxu0 %v1653_v43 }
 0x398   :  { %1466 = vmatprep.subr.bf16.mxu0 %v1523_v24 }
 0x465   :  { %v649_v28 = vpop.f32.mrb[16].mxu0 }
 0x466   :  { %v650_v29 = vadd.f32 %v649_v28, %v579_v27  ;;  %v1339_v30 = vpop.f32.mrb[17].mxu0 }
 0x468   :  { %1497 = vtanh.f32 %v650_v29 }
 0x472   :  { %v1498_v31 = vpop.eup %1497 }
 0x473   :  { %655 = vst.msk [vmem:[#allocation3 + $0x18] sm:$0xff] %vm413_vm4, %v1498_v31  ;;  %1349 = vmatmul.mubr.msk.f32.vlgmr.msra.gmra.mrb[6].mxu1 %vm324_vm3, %v1498_v31 }
 0x474   :  { %657 = vst.msk [vmem:[#allocation3 + $0x20] sm:$0xff] %vm416_vm5, %v1498_v31  ;;  %1462 = vmatpush3.bf16.msra.mxu1 %v1642_v34  ;;  %1370 = vmatprep.mubr.msk.f32.mxu1 %vm1524_vm2, %v1525_v49 }
 0x475   :  { %1463 = vmatprep.subr.bf16.mxu1 %v1523_v24 }
 0x478   :  { %1465 = vmatpush3.bf16.msra.mxu1 %v1653_v43 }
 0x546   :  { %v729_v33 = vpop.f32.mrb[6].mxu1 }
 0x547   :  { %v730_v35 = vadd.f32 %v729_v33, %v659_v32  ;;  %v1350_v36 = vpop.f32.mrb[7].mxu1 }
 0x549   :  { %1499 = vtanh.f32 %v730_v35 }
 0x553   :  { %v1500_v37 = vpop.eup %1499 }
 0x554   :  { %734 = vst.msk [vmem:[#allocation3 + $0x20] sm:$0xff] %vm413_vm4, %v1500_v37  ;;  %1360 = vmatmul.mubr.msk.f32.vlgmr.msra.gmra.mrb[18].mxu0 %vm324_vm3, %v1500_v37 }
 0x555   :  { %735 = vst.msk [vmem:[#allocation3 + $0x18] sm:$0xff] %vm416_vm5, %v1500_v37  ;;  %1468 = vmatpush3.bf16.msra.mxu0 %v1642_v34  ;;  %1381 = vmatprep.mubr.msk.f32.mxu0 %vm1524_vm2, %v1525_v49  ;;  %v815_v34 = vld [vmem:[#allocation2 + $0x30] sm:$0xff] }
 0x556   :  { %1469 = vmatprep.subr.bf16.mxu0 %v1523_v24  ;;  %v980_v49 = vld [vmem:[%s1805_s5 + $0x10] sm:$0xff] }
 0x557   :  { %v1476_v51 = vpack.c.bf16 %v981_v50, %v980_v49 }
 0x559   :  { %1471 = vmatpush3.bf16.msra.mxu0 %v1653_v43  ;;  %v978_v43 = vld [vmem:[%s1805_s5] sm:$0xff] }
 0x55a   :  { %v1472_v48 = vpack.c.bf16 %v979_v47, %v978_v43 }
 0x55b   :  { %v974_v61 = vld [vmem:[#allocation3 + $0x20] sm:$0xff] }
 0x55c   :  { %1473 = vmatprep.subr.bf16.mxu1 %v1472_v48  ;;  %v973_v60 = vld [vmem:[#allocation3 + $0x18] sm:$0xff] }
 0x627   :  { %v807_v39 = vpop.f32.mrb[18].mxu0 }
 0x628   :  { %v808_v40 = vadd.f32 %v807_v39, %v737_v38  ;;  %v1361_v41 = vpop.f32.mrb[19].mxu0 }
 0x62a   :  { %1501 = vtanh.f32 %v808_v40 }
 0x634   :  { %v1502_v42 = vpop.eup %1501 }
 0x635   :  { %812 = vst.msk [vmem:[#allocation3 + $0x28] sm:$0xff] %vm413_vm4, %v1502_v42  ;;  %1371 = vmatmul.mubr.msk.f32.vlgmr.msra.gmra.mrb[8].mxu1 %vm324_vm3, %v1502_v42 }
 0x636   :  { %813 = vst.msk [vmem:[#allocation3 + $0x10] sm:$0xff] %vm416_vm5, %v1502_v42  ;;  %1475 = vmatpush3.bf16.msra.mxu1 %v1472_v48 }
 0x637   :  { %1477 = vmatprep.subr.bf16.mxu1 %v1476_v51 }
 0x63a   :  { %1479 = vmatpush3.bf16.msra.mxu1 %v1476_v51 }
 0x63c   :  { %v975_v62 = vld [vmem:[#allocation3 + $0x28] sm:$0xff] }
 0x63d   :  { %v972_v59 = vld [vmem:[#allocation3 + $0x10] sm:$0xff] }
 0x708   :  { %v885_v44 = vpop.f32.mrb[8].mxu1 }
 0x709   :  { %v886_v45 = vadd.f32 %v885_v44, %v815_v34  ;;  %v1372_v46 = vpop.f32.mrb[9].mxu1 }
 0x70b   :  { %1503 = vtanh.f32 %v886_v45 }
 0x715   :  { %v1504_v24 = vpop.eup %1503 }
 0x716   :  { %890 = vst.msk [vmem:[#allocation3 + $0x30] sm:$0xff] %vm413_vm4, %v1504_v24  ;;  %1382 = vmatmul.mubr.msk.f32.vlgmr.msra.gmra.mrb[20].mxu0 %vm324_vm3, %v1504_v24 }
 0x717   :  { %891 = vst.msk [vmem:[#allocation3 + $0x8] sm:$0xff] %vm416_vm5, %v1504_v24 }
 0x71d   :  { %v976_v63 = vld [vmem:[#allocation3 + $0x30] sm:$0xff] }
 0x71e   :  { %v971_v58 = vld [vmem:[#allocation3 + $0x8] sm:$0xff] }
 0x7e9   :  { %v963_v53 = vpop.f32.mrb[20].mxu0 }
 0x7ea   :  { %v964_v54 = vadd.f32 %v963_v53, %v893_v52  ;;  %v1383_v55 = vpop.f32.mrb[21].mxu0 }
 0x7ec   :  { %1505 = vtanh.f32 %v964_v54 }
 0x7f6   :  { %v1506_v56 = vpop.eup %1505 }
 0x7f7   :  { %968 = vst.msk [vmem:[#allocation3 + $0x38] sm:$0xff] %vm413_vm4, %v1506_v56 }
 0x7f8   :  { %969 = vst.msk [vmem:[#allocation3] sm:$0xff] %vm416_vm5, %v1506_v56 }
 0x7fe   :  { %v977_v0 = vld [vmem:[#allocation3 + $0x38] sm:$0xff] }
 0x7ff   :  { %v970_v57 = vld [vmem:[#allocation3] sm:$0xff] }
 0x800   :  { %1392 = vmatprep.mubr.msk.f32.mxu1 %vm324_vm3, %v970_v57 }
 0x801   :  { %1393 = vmatmul.mubr.msk.f32.vlgmr.msra.gmra.mrb[10].mxu1 %vm324_vm3, %v971_v58 }
 0x802   :  { %1395 = vmatprep.mubr.msk.f32.mxu1 %vm324_vm3, %v972_v59 }
 0x805   :  { %1396 = vmatmul.mubr.msk.f32.gmra.mrb[12].mxu1 %vm324_vm3, %v973_v60 }
 0x806   :  { %1398 = vmatprep.mubr.msk.f32.mxu1 %vm324_vm3, %v974_v61 }
 0x809   :  { %1399 = vmatmul.mubr.msk.f32.gmra.mrb[14].mxu1 %vm324_vm3, %v975_v62 }
 0x80a   :  { %1401 = vmatprep.mubr.msk.f32.mxu1 %vm324_vm3, %v976_v63 }
 0x80d   :  { %1402 = vmatmul.mubr.msk.f32.gmra.mrb[16].mxu1 %vm324_vm3, %v977_v0 }
 0x8d4   :  { %v1394_v2 = vpop.f32.mrb[10].mxu1 }
 0x8d5   :  { %v1082_v3 = vadd.f32 %v1394_v2, %v1162_v1  ;;  %v1076_v4 = vpop.f32.mrb[11].mxu1 }
 0x8d6   :  { %v1077_v5 = vadd.f32 %v1162_v1, %v1076_v4 }
 0x8d7   :  { %1507 = vtanh.f32 %v1082_v3 }
 0x8d8   :  { %1509 = vtanh.f32 %v1077_v5  ;;  %v1397_v6 = vpop.f32.mrb[12].mxu1 }
 0x8d9   :  { %v1092_v7 = vadd.f32 %v1397_v6, %v1162_v1  ;;  %v1086_v8 = vpop.f32.mrb[13].mxu1 }
 0x8da   :  { %v1087_v9 = vadd.f32 %v1162_v1, %v1086_v8 }
 0x8db   :  { %1511 = vtanh.f32 %v1092_v7 }
 0x8dc   :  { %1513 = vtanh.f32 %v1087_v9  ;;  %v1400_v10 = vpop.f32.mrb[14].mxu1 }
 0x8dd   :  { %v1102_v11 = vadd.f32 %v1400_v10, %v1162_v1  ;;  %v1096_v12 = vpop.f32.mrb[15].mxu1 }
 0x8de   :  { %v1097_v13 = vadd.f32 %v1162_v1, %v1096_v12 }
 0x8df   :  { %1515 = vtanh.f32 %v1102_v11 }
 0x8e0   :  { %1517 = vtanh.f32 %v1097_v13  ;;  %v1403_v14 = vpop.f32.mrb[16].mxu1 }
 0x8e1   :  { %v1508_v15 = vpop.eup %1507  ;;  %v1112_v16 = vadd.f32 %v1403_v14, %v1162_v1  ;;  %v1106_v17 = vpop.f32.mrb[17].mxu1 }
 0x8e2   :  { %v1510_v18 = vpop.eup %1509  ;;  %1125 = vst.msk [vmem:[%s1806_s7 + $0x8] sm:$0xff] %vm1123_vm6, %v1508_v15  ;;  %v1107_v19 = vadd.f32 %v1162_v1, %v1106_v17 }
 0x8e3   :  { %1124 = vst.msk [vmem:[%s1806_s7] sm:$0xff] %vm1123_vm6, %v1510_v18  ;;  %1519 = vtanh.f32 %v1112_v16 }
 0x8e4   :  { %1521 = vtanh.f32 %v1107_v19 }
 0x8e5   :  { %v1512_v20 = vpop.eup %1511 }
 0x8e6   :  { %v1514_v21 = vpop.eup %1513  ;;  %1127 = vst.msk [vmem:[%s1806_s7 + $0x18] sm:$0xff] %vm1123_vm6, %v1512_v20 }
 0x8e7   :  { %1126 = vst.msk [vmem:[%s1806_s7 + $0x10] sm:$0xff] %vm1123_vm6, %v1514_v21 }
 0x8e9   :  { %v1516_v22 = vpop.eup %1515 }
 0x8ea   :  { %v1518_v23 = vpop.eup %1517  ;;  %1129 = vst.msk [vmem:[%s1806_s7 + $0x28] sm:$0xff] %vm1123_vm6, %v1516_v22 }
 0x8eb   :  { %1128 = vst.msk [vmem:[%s1806_s7 + $0x20] sm:$0xff] %vm1123_vm6, %v1518_v23 }
 0x8ed   :  { %v1520_v25 = vpop.eup %1519 }
 0x8ee   :  { %v1522_v26 = vpop.eup %1521  ;;  %1131 = vst.msk [vmem:[%s1806_s7 + $0x38] sm:$0xff] %vm1123_vm6, %v1520_v25 }
 0x8ef   :  { %1130 = vst.msk [vmem:[%s1806_s7 + $0x30] sm:$0xff] %vm1123_vm6, %v1522_v26 }

</bundles_post_ra>
